<compile_context>
chip_gen: v7x
topology: tpu7x:2x2x1
jax: 0.10.0
libtpu: 0.0.40
codegen_flags: <defaults>
</compile_context>

<pallas_src>
import functools

import numpy as np
import jax
import jax.numpy as jnp
from jax import lax
from jax.experimental import pallas as pl
from jax.experimental.pallas import tpu as pltpu

# ---- config (mirrors the config fields NCSNv2_128.__init__ reads) -------------------
CENTERED = False          # config.data.centered
CHANNELS = 3              # config.data.channels
IMAGE_SIZE = 16           # small test size (architecture is size agnostic)
NF = 16                   # config.model.nf
NUM_SCALES = 8            # config.model.num_scales
SIGMA_MAX, SIGMA_MIN = 50.0, 0.01
# config.model.nonlinearity == 'elu'; config.model.normalization == 'InstanceNorm++'

_VMEM = pl.BlockSpec(memory_space=pltpu.MemorySpace.VMEM)


# ================================ in-kernel helpers ==================================

def _elu(x):
    return jnp.where(x > 0, x, jnp.exp(jnp.minimum(x, 0.0)) - 1.0)


def _shift(x, s):
    """Circular lane shift: y[:, j] = x[:, (j + s) % M].  Caller masks invalid lanes.

    TODO(synk): use pltpu.roll for 128-aligned M to move this onto the idle XLU slot.
    """
    m = x.shape[-1]
    s %= m
    if s == 0:
        return x
    return jnp.concatenate([x[:, s:], x[:, :s]], axis=1)


def _conv_mxu(x, w, taps, mask_bf):
    """One stacked bf16 MXU matmul for a stride-1 conv realised as lane-shift taps.

    x: (Cin, M) f32, w: (Cout, n_taps*Cin) bf16, mask_bf: (n_masks, M) bf16 0/1.
    """
    xb = x.astype(jnp.bfloat16)
    parts = []
    for s, mi in taps:
        v = _shift(xb, s)
        if mi is not None:
            v = v * mask_bf[mi:mi + 1, :]
        parts.append(v)
    stack = parts[0] if len(parts) == 1 else jnp.concatenate(parts, axis=0)
    return jnp.dot(w, stack, preferred_element_type=jnp.float32)


def _maxpool5(x, pool_taps, mask_f):
    """Separable masked 5x5 max-pool (stride 1, pad 2) on the folded (C, M) map."""
    neg = jnp.float32(-1e30)
    mask_b = mask_f > 0.5
    for stage in pool_taps:                 # rows pass then columns pass
        red = None
        for s, mi in stage:
            v = _shift(x, s)
            if mi is not None:
                v = jnp.where(mask_b[mi:mi + 1, :], v, neg)
            red = v if red is None else jnp.maximum(red, v)
        x = red
    return x


def _instance_norm_pp(x, p, segT, seg):
    """InstanceNorm2dPlus on the folded layout using segment matmuls for per-image stats.

    x: (C, M=N*HW) f32, p: (C, 3) = [gamma | alpha | beta],
    segT: (M, N) with 1/HW on each image's lanes, seg: (N, M) 0/1 indicator.
    """
    gamma, alpha, beta = p[:, 0:1], p[:, 1:2], p[:, 2:3]
    c = x.shape[0]
    mu = jnp.dot(x, segT, preferred_element_type=jnp.float32)              # (C, N) spatial means
    mu_full = jnp.dot(mu, seg, preferred_element_type=jnp.float32)         # broadcast back
    d = x - mu_full
    var = jnp.dot(d * d, segT, preferred_element_type=jnp.float32)         # biased spatial var
    inv_full = jnp.dot(lax.rsqrt(var + 1e-5), seg, preferred_element_type=jnp.float32)
    m_im = jnp.mean(mu, axis=0, keepdims=True)                             # mean of channel means
    v_im = jnp.sum((mu - m_im) ** 2, axis=0, keepdims=True) / (c - 1)      # unbiased (torch.var)
    mn = (mu - m_im) * lax.rsqrt(v_im + 1e-5)                              # (C, N)
    corr_full = jnp.dot(mn * alpha, seg, preferred_element_type=jnp.float32)
    return gamma * (d * inv_full + corr_full) + beta


# ================================ Pallas kernels =====================================

def _conv_kernel(x_ref, w_ref, m_ref, *rest,
                 taps, pre_norm, pre_elu, has_bias, has_res):
    """Fused single conv: [InstanceNorm++]->[ELU]->conv(+bias)(+residual)."""
    i = 0
    if pre_norm:
        np_ref, segT_ref, seg_ref = rest[i], rest[i + 1], rest[i + 2]
        i += 3
    if has_bias:
        b_ref = rest[i]
        i += 1
    if has_res:
        r_ref = rest[i]
        i += 1
    o_ref = rest[i]

    x = x_ref[...]
    mask_bf = m_ref[...].astype(jnp.bfloat16)          # hoisted once per invocation

    if pre_norm:
        x = _instance_norm_pp(x, np_ref[...], segT_ref[...], seg_ref[...])
    if pre_elu:
        x = _elu(x)
    y = _conv_mxu(x, w_ref[...], taps, mask_bf)
    if has_bias:
        y = y + b_ref[...]
    if has_res:
        y = y + r_ref[...]
    o_ref[...] = y


def _rcu_kernel(x_ref, w_ref, m_ref, o_ref, *, taps, n_blocks, n_stages):
    """Whole RCUBlock: n_blocks x [residual; n_stages x (ELU -> conv, bias-free); add]."""
    x = x_ref[...]
    mask_bf = m_ref[...].astype(jnp.bfloat16)
    idx = 0
    for _ in range(n_blocks):
        res = x
        for _ in range(n_stages):
            x = _conv_mxu(_elu(x), w_ref[idx], taps, mask_bf)
            idx += 1
        x = x + res
    o_ref[...] = x


def _crp_kernel(x_ref, w_ref, m_ref, o_ref, *, taps, pool_taps, n_stages):
    """Whole CRPBlock: ELU; then n_stages x (5x5 maxpool -> conv, bias-free; running add)."""
    mask_f = m_ref[...]
    mask_bf = mask_f.astype(jnp.bfloat16)
    x = _elu(x_ref[...])
    path = x
    for i in range(n_stages):
        path = _maxpool5(path, pool_taps, mask_f)
        path = _conv_mxu(path, w_ref[i], taps, mask_bf)
        x = x + path
    o_ref[...] = x


# ================================ static tap / mask config ===========================

@functools.lru_cache(maxsize=None)
def _tap_config(n, h, w, k, d, with_pool):
    """Static tap shifts + 0/1 validity masks (tiled over the folded batch)."""
    hw = h * w
    r = np.arange(hw)
    hh, ww = r // w, r % w
    masks, cache = [], {}

    def add_mask(dh, dw):
        key = (dh, dw)
        if key in cache:
            return cache[key]
        valid = (hh + dh >= 0) & (hh + dh < h) & (ww + dw >= 0) & (ww + dw < w)
        if not valid.any():
            out = "skip"                         # tap only ever touches zero padding
        elif valid.all():
            out = None                           # no masking needed
        else:
            masks.append(np.tile(valid.astype(np.float32), n))
            out = len(masks) - 1
        cache[key] = out
        return out

    taps = []
    if k == 1:
        taps.append((0, 0, None))
    else:
        for kh in range(3):
            for kw in range(3):
                dh, dw = (kh - 1) * d, (kw - 1) * d
                mi = add_mask(dh, dw)
                if mi == "skip":
                    continue
                s = dh * w + dw
                # batch folded onto lanes: every nonzero shift MUST carry a mask
                assert s == 0 or mi is not None
                taps.append((kh * 3 + kw, s, mi))

    pool_taps = None
    if with_pool:
        stages = []
        for is_row in (True, False):
            stage = []
            for dd in (-2, -1, 0, 1, 2):
                dh, dw = (dd, 0) if is_row else (0, dd)
                mi = add_mask(dh, dw)
                if mi == "skip":
                    continue
                s = dh * w + dw
                assert s == 0 or mi is not None
                stage.append((s, mi))
            stages.append(tuple(stage))
        pool_taps = tuple(stages)

    if not masks:                                # keep operand signature uniform
        masks.append(np.ones(n * hw, np.float32))
    return tuple(taps), pool_taps, np.stack(masks, axis=0)


@functools.lru_cache(maxsize=None)
def _seg_matrices(n, hw):
    """Segment matrices for per-image stats in the folded (C, N*HW) layout."""
    seg = np.zeros((n, n * hw), np.float32)
    for i in range(n):
        seg[i, i * hw:(i + 1) * hw] = 1.0
    segT = np.ascontiguousarray((seg / float(hw)).T)     # (M, N), entries 1/HW
    return segT, seg


def _select_weight(p, kk):
    """Host-side weight re-layout: (Cout, k*k, Cin) -> (Cout, n_taps*Cin) bf16."""
    cout = p["w"].shape[0]
    wsel = p["w"] if len(kk) == p["w"].shape[1] else p["w"][:, np.asarray(kk), :]
    return wsel.reshape(cout, -1).astype(jnp.bfloat16)


# ================================ kernel wrappers ====================================

def conv_op(x, p, n, h, w, *, pre_norm=None, pre_elu=False, residual=None):
    """x: (Cin, N*H*W) -> (Cout, N*H*W); stride-1 conv, padding = dilation*(k//2)."""
    cin, m = x.shape
    cout = p["w"].shape[0]
    taps, _, masks = _tap_config(n, h, w, p["k"], p["d"], False)
    kk = [t for (t, s, mi) in taps]
    ktaps = tuple((s, mi) for (t, s, mi) in taps)

    args = [x, _select_weight(p, kk), jnp.asarray(masks)]
    if pre_norm is not None:
        segT, seg = _seg_matrices(n, h * w)
        args += [pre_norm, jnp.asarray(segT), jnp.asarray(seg)]
    if p["b"] is not None:
        args.append(p["b"])
    if residual is not None:
        args.append(residual)

    kern = functools.partial(_conv_kernel, taps=ktaps,
                             pre_norm=pre_norm is not None, pre_elu=pre_elu,
                             has_bias=p["b"] is not None,
                             has_res=residual is not None)
    return pl.pallas_call(
        kern,
        out_shape=jax.ShapeDtypeStruct((cout, m), jnp.float32),
        in_specs=[_VMEM] * len(args),
        out_specs=_VMEM,
    )(*args)


def rcu_op(x, convs, n_blocks, n_stages, n, h, w):
    """One pallas_call for a whole RCUBlock (all convs bias-free, same shape)."""
    c, m = x.shape
    taps, _, masks = _tap_config(n, h, w, 3, 1, False)
    kk = [t for (t, s, mi) in taps]
    ktaps = tuple((s, mi) for (t, s, mi) in taps)
    w_stack = jnp.stack([_select_weight(cv, kk) for cv in convs])
    kern = functools.partial(_rcu_kernel, taps=ktaps,
                             n_blocks=n_blocks, n_stages=n_stages)
    return pl.pallas_call(
        kern,
        out_shape=jax.ShapeDtypeStruct((c, m), jnp.float32),
        in_specs=[_VMEM] * 3,
        out_specs=_VMEM,
    )(x, w_stack, jnp.asarray(masks))


def crp_op(x, convs, n_stages, n, h, w):
    """One pallas_call for a whole CRPBlock (ELU + maxpool/conv chain + running sum)."""
    c, m = x.shape
    taps, pool_taps, masks = _tap_config(n, h, w, 3, 1, True)
    kk = [t for (t, s, mi) in taps]
    ktaps = tuple((s, mi) for (t, s, mi) in taps)
    w_stack = jnp.stack([_select_weight(cv, kk) for cv in convs])
    kern = functools.partial(_crp_kernel, taps=ktaps, pool_taps=pool_taps,
                             n_stages=n_stages)
    return pl.pallas_call(
        kern,
        out_shape=jax.ShapeDtypeStruct((c, m), jnp.float32),
        in_specs=[_VMEM] * 3,
        out_specs=_VMEM,
    )(x, w_stack, jnp.asarray(masks))


# ================================ XLA glue ===========================================

def _fold(x):                    # (N, C, H, W) -> (C, N*H*W)
    n, c, h, w = x.shape
    return jnp.transpose(x, (1, 0, 2, 3)).reshape(c, n * h * w)


def _unfold(x, n, h, w):         # (C, N*H*W) -> (N, C, H, W)
    c = x.shape[0]
    return jnp.transpose(x.reshape(c, n, h, w), (1, 0, 2, 3))


def mean_pool2(x, n, h, w):
    """ConvMeanPool pooling: average of the four 2x2-strided phases (folded layout)."""
    c = x.shape[0]
    x4 = x.reshape(c, n, h, w)
    p = (x4[:, :, 0::2, 0::2] + x4[:, :, 1::2, 0::2]
         + x4[:, :, 0::2, 1::2] + x4[:, :, 1::2, 1::2]) * 0.25
    return p.reshape(c, n * (h // 2) * (w // 2))


def resize_bilinear(x, n, h, w, ho, wo):
    """F.interpolate(mode='bilinear', align_corners=True) on the folded layout."""
    if (h, w) == (ho, wo):
        return x
    c = x.shape[0]
    x4 = x.reshape(c, n, h, w)

    def coords(n_in, n_out):
        src = jnp.arange(n_out, dtype=jnp.float32) * (n_in - 1) / max(n_out - 1, 1)
        i0 = jnp.clip(jnp.floor(src).astype(jnp.int32), 0, n_in - 1)
        i1 = jnp.clip(i0 + 1, 0, n_in - 1)
        return i0, i1, src - i0.astype(jnp.float32)

    h0, h1, fh = coords(h, ho)
    w0, w1, fw = coords(w, wo)
    xh = (x4[:, :, h0, :] * (1.0 - fh)[None, None, :, None]
          + x4[:, :, h1, :] * fh[None, None, :, None])
    out = (xh[:, :, :, w0] * (1.0 - fw)[None, None, None, :]
           + xh[:, :, :, w1] * fw[None, None, None, :])
    return out.reshape(c, n * ho * wo)


# ================================ parameters =========================================

class ParamGen:
    def __init__(self, seed=0):
        self._key = jax.random.PRNGKey(seed)
        self._n = 0

    def key(self):
        self._n += 1
        return jax.random.fold_in(self._key, self._n)


def make_conv(pg, cin, cout, k, *, bias=True, dilation=1):
    fan_in = cin * k * k
    bound = 1.0 / (fan_in ** 0.5)
    w = jax.random.uniform(pg.key(), (cout, k * k, cin), jnp.float32, -bound, bound)
    b = (jax.random.uniform(pg.key(), (cout, 1), jnp.float32, -bound, bound)
         if bias else None)
    return {"w": w, "b": b, "k": k, "d": dilation}


def make_norm(pg, c):
    gamma = 1.0 + 0.02 * jax.random.normal(pg.key(), (c, 1), jnp.float32)
    alpha = 1.0 + 0.02 * jax.random.normal(pg.key(), (c, 1), jnp.float32)
    beta = jnp.zeros((c, 1), jnp.float32)
    return jnp.concatenate([gamma, alpha, beta], axis=1)       # (C, 3)


# ================================ NCSNv2 sub-modules =================================

def make_resblock(pg, in_dim, out_dim, resample, dilation):
    p = {"in": in_dim, "out": out_dim, "resample": resample, "dilation": dilation}
    p["norm1"] = make_norm(pg, in_dim)
    if resample == "down":
        if dilation > 1:
            p["conv1"] = make_conv(pg, in_dim, in_dim, 3, dilation=dilation)
            p["norm2"] = make_norm(pg, in_dim)
            p["conv2"] = make_conv(pg, in_dim, out_dim, 3, dilation=dilation)
            p["shortcut"] = make_conv(pg, in_dim, out_dim, 3, dilation=dilation)
        else:
            p["conv1"] = make_conv(pg, in_dim, in_dim, 3)
            p["norm2"] = make_norm(pg, in_dim)
            p["conv2"] = make_conv(pg, in_dim, out_dim, 3)        # ConvMeanPool conv
            p["shortcut"] = make_conv(pg, in_dim, out_dim, 1)     # ConvMeanPool 1x1
    else:
        if dilation > 1:
            p["conv1"] = make_conv(pg, in_dim, out_dim, 3, dilation=dilation)
            p["norm2"] = make_norm(pg, out_dim)
            p["conv2"] = make_conv(pg, out_dim, out_dim, 3, dilation=dilation)
            if in_dim != out_dim:
                p["shortcut"] = make_conv(pg, in_dim, out_dim, 3, dilation=dilation)
        else:
            p["conv1"] = make_conv(pg, in_dim, out_dim, 3)
            p["norm2"] = make_norm(pg, out_dim)
            p["conv2"] = make_conv(pg, out_dim, out_dim, 3)
            if in_dim != out_dim:
                p["shortcut"] = make_conv(pg, in_dim, out_dim, 1)
    return p


def resblock_forward(p, x, n, h, w):
    if p["resample"] == "down" and p["dilation"] == 1:
        hid = conv_op(x, p["conv1"], n, h, w, pre_norm=p["norm1"], pre_elu=True)
        hid = conv_op(hid, p["conv2"], n, h, w, pre_norm=p["norm2"], pre_elu=True)
        hid = mean_pool2(hid, n, h, w)
        sc = mean_pool2(conv_op(x, p["shortcut"], n, h, w), n, h, w)
        # TODO(synk): the post-pool shortcut add cannot be fused without in-kernel
        # strided subsampling; left as XLA glue.
        return sc + hid, h // 2, w // 2
    hid = conv_op(x, p["conv1"], n, h, w, pre_norm=p["norm1"], pre_elu=True)
    if p["resample"] == "down" or p["in"] != p["out"]:
        sc = conv_op(x, p["shortcut"], n, h, w)
    else:
        sc = x
    hid = conv_op(hid, p["conv2"], n, h, w, pre_norm=p["norm2"], pre_elu=True,
                  residual=sc)                                    # shortcut add fused
    return hid, h, w


def make_rcu(pg, features, n_blocks, n_stages):
    return {"convs": [make_conv(pg, features, features, 3, bias=False)
                      for _ in range(n_blocks * n_stages)],
            "n_blocks": n_blocks, "n_stages": n_stages}


def rcu_forward(p, x, n, h, w):
    return rcu_op(x, p["convs"], p["n_blocks"], p["n_stages"], n, h, w)


def make_msf(pg, in_planes, features):
    return [make_conv(pg, c, features, 3, bias=True) for c in in_planes]


def msf_forward(p, xs, dims, out_hw, n):
    ho, wo = out_hw
    total = None
    for conv, xi, (hi, wi) in zip(p, xs, dims):
        same = (hi, wi) == (ho, wo)
        y = conv_op(xi, conv, n, hi, wi,
                    residual=total if (total is not None and same) else None)
        if not same:
            y = resize_bilinear(y, n, hi, wi, ho, wo)
            total = y if total is None else total + y
        else:
            total = y
    return total


def make_crp(pg, features, n_stages):
    return {"convs": [make_conv(pg, features, features, 3, bias=False)
                      for _ in range(n_stages)],
            "n_stages": n_stages}


def crp_forward(p, x, n, h, w):
    return crp_op(x, p["convs"], p["n_stages"], n, h, w)


def make_refine(pg, in_planes, features, start=False, end=False):
    p = {"start": start, "n": len(in_planes)}
    p["adapt"] = [make_rcu(pg, c, 2, 2) for c in in_planes]
    p["output"] = make_rcu(pg, features, 3 if end else 1, 2)
    if not start:
        p["msf"] = make_msf(pg, in_planes, features)
    p["crp"] = make_crp(pg, features, 2)
    return p


def refine_forward(p, xs, dims, out_hw, n):
    hs = [rcu_forward(p["adapt"][i], xs[i], n, dims[i][0], dims[i][1])
          for i in range(len(xs))]
    hmap = msf_forward(p["msf"], hs, dims, out_hw, n) if p["n"] > 1 else hs[0]
    ho, wo = out_hw
    hmap = crp_forward(p["crp"], hmap, n, ho, wo)
    return rcu_forward(p["output"], hmap, n, ho, wo)


# ================================ NCSNv2_128 =========================================

def make_model(pg):
    nf = NF
    p = {
        "begin_conv": make_conv(pg, CHANNELS, nf, 3),
        "normalizer": make_norm(pg, nf),
        "end_conv": make_conv(pg, nf, CHANNELS, 3),
        "res1": [make_resblock(pg, nf, nf, None, 1), make_resblock(pg, nf, nf, None, 1)],
        "res2": [make_resblock(pg, nf, 2 * nf, "down", 1), make_resblock(pg, 2 * nf, 2 * nf, None, 1)],
        "res3": [make_resblock(pg, 2 * nf, 2 * nf, "down", 1), make_resblock(pg, 2 * nf, 2 * nf, None, 1)],
        "res4": [make_resblock(pg, 2 * nf, 4 * nf, "down", 2), make_resblock(pg, 4 * nf, 4 * nf, None, 2)],
        "res5": [make_resblock(pg, 4 * nf, 4 * nf, "down", 4), make_resblock(pg, 4 * nf, 4 * nf, None, 4)],
    }
    p["refine1"] = make_refine(pg, [4 * nf], 4 * nf, start=True)
    p["refine2"] = make_refine(pg, [4 * nf, 4 * nf], 2 * nf)
    p["refine3"] = make_refine(pg, [2 * nf, 2 * nf], 2 * nf)
    p["refine4"] = make_refine(pg, [2 * nf, 2 * nf], nf)
    p["refine5"] = make_refine(pg, [nf, nf], nf, end=True)
    p["sigmas"] = jnp.asarray(
        np.exp(np.linspace(np.log(SIGMA_MAX), np.log(SIGMA_MIN), NUM_SCALES)), jnp.float32)
    return p


def ncsn_forward(params, x_nchw, y):
    nb, c, h, w = x_nchw.shape
    x = x_nchw.astype(jnp.float32)
    himg = x if CENTERED else 2.0 * x - 1.0
    cur = conv_op(_fold(himg), params["begin_conv"], nb, h, w)

    def group(blocks, xx, hh, ww):
        for b in blocks:
            xx, hh, ww = resblock_forward(b, xx, nb, hh, ww)
        return xx, hh, ww

    l1, h1, w1 = group(params["res1"], cur, h, w)
    l2, h2, w2 = group(params["res2"], l1, h1, w1)
    l3, h3, w3 = group(params["res3"], l2, h2, w2)
    l4, h4, w4 = group(params["res4"], l3, h3, w3)
    l5, h5, w5 = group(params["res5"], l4, h4, w4)

    r1 = refine_forward(params["refine1"], [l5], [(h5, w5)], (h5, w5), nb)
    r2 = refine_forward(params["refine2"], [l4, r1], [(h4, w4), (h5, w5)], (h4, w4), nb)
    r3 = refine_forward(params["refine3"], [l3, r2], [(h3, w3), (h4, w4)], (h3, w3), nb)
    r4 = refine_forward(params["refine4"], [l2, r3], [(h2, w2), (h3, w3)], (h2, w2), nb)
    out = refine_forward(params["refine5"], [l1, r4], [(h1, w1), (h2, w2)], (h1, w1), nb)

    # normalizer + ELU fused into end_conv prologue
    out = conv_op(out, params["end_conv"], nb, h1, w1,
                  pre_norm=params["normalizer"], pre_elu=True)
    sig = params["sigmas"][y]                                    # (N,)
    out = out.reshape(CHANNELS, nb, h1 * w1) / sig[None, :, None]
    return jnp.transpose(out.reshape(CHANNELS, nb, h1, w1), (1, 0, 2, 3))


# ================================ self-test references (pure JAX) ====================

def _ref_conv(x, p):
    k, d = p["k"], p["d"]
    cout, cin = p["w"].shape[0], p["w"].shape[2]
    wk = p["w"].reshape(cout, k, k, cin).transpose(0, 3, 1, 2)
    pad = d * (k // 2)
    out = lax.conv_general_dilated(x, wk, (1, 1), [(pad, pad), (pad, pad)],
                                   rhs_dilation=(d, d),
                                   dimension_numbers=("NCHW", "OIHW", "NCHW"))
    if p["b"] is not None:
        out = out + p["b"].reshape(1, cout, 1, 1)
    return out


def _ref_norm_elu(x, p):
    gamma = p[:, 0].reshape(1, -1, 1, 1)
    alpha = p[:, 1].reshape(1, -1, 1, 1)
    beta = p[:, 2].reshape(1, -1, 1, 1)
    mu = x.mean(axis=(2, 3), keepdims=True)
    var = x.var(axis=(2, 3), keepdims=True)
    hh = (x - mu) / jnp.sqrt(var + 1e-5)
    means = mu[:, :, 0, 0]
    m = means.mean(axis=1, keepdims=True)
    v = means.var(axis=1, keepdims=True, ddof=1)
    mn = ((means - m) / jnp.sqrt(v + 1e-5))[:, :, None, None]
    return jax.nn.elu(gamma * (hh + mn * alpha) + beta)


def _ref_maxpool5(x):
    return lax.reduce_window(x, -jnp.inf, lax.max, (1, 1, 5, 5), (1, 1, 1, 1),
                             [(0, 0), (0, 0), (2, 2), (2, 2)])


def _self_test():
    n, c, h, w = 2, 8, 8, 8
    x = jax.random.normal(jax.random.PRNGKey(42), (n, c, h, w), jnp.float32)
    xf = _fold(x)
    pg = ParamGen(7)
    tol = dict(rtol=0.1, atol=0.1)

    p = make_conv(pg, c, c, 3)
    got = _unfold(conv_op(xf, p, n, h, w), n, h, w)
    np.testing.assert_allclose(np.asarray(got), np.asarray(_ref_conv(x, p)), **tol)

    pd = make_conv(pg, c, c, 3, dilation=2)
    got = _unfold(conv_op(xf, pd, n, h, w), n, h, w)
    np.testing.assert_allclose(np.asarray(got), np.asarray(_ref_conv(x, pd)), **tol)

    nrm = make_norm(pg, c)
    got = _unfold(conv_op(xf, p, n, h, w, pre_norm=nrm, pre_elu=True), n, h, w)
    ref = _ref_conv(_ref_norm_elu(x, nrm), p)
    np.testing.assert_allclose(np.asarray(got), np.asarray(ref), **tol)

    rcu = make_rcu(pg, c, 2, 2)
    got = _unfold(rcu_forward(rcu, xf, n, h, w), n, h, w)
    ref, idx = x, 0
    for _ in range(2):
        res = ref
        for _ in range(2):
            ref = _ref_conv(jax.nn.elu(ref), rcu["convs"][idx])
            idx += 1
        ref = ref + res
    np.testing.assert_allclose(np.asarray(got), np.asarray(ref), rtol=0.2, atol=0.2)

    crp = make_crp(pg, c, 2)
    got = _unfold(crp_forward(crp, xf, n, h, w), n, h, w)
    ref = jax.nn.elu(x)
    path = ref
    for cv in crp["convs"]:
        path = _ref_conv(_ref_maxpool5(path), cv)
        ref = ref + path
    np.testing.assert_allclose(np.asarray(got), np.asarray(ref), rtol=0.2, atol=0.2)


# ================================ main ===============================================

if __name__ == "__main__":
    _self_test()                       # kernel vs. pure-JAX reference (loose bf16 tol)

    pg = ParamGen(0)
    params = make_model(pg)

    key = jax.random.PRNGKey(0)
    kx, ky = jax.random.split(key)
    x = jax.random.uniform(kx, (2, CHANNELS, IMAGE_SIZE, IMAGE_SIZE), jnp.float32)  # NCHW
    y = jax.random.randint(ky, (2,), 0, NUM_SCALES, dtype=jnp.int32)                # noise labels

    fwd = jax.jit(functools.partial(ncsn_forward, params))
    out = jax.block_until_ready(fwd(x, y))
    assert out.shape == (2, CHANNELS, IMAGE_SIZE, IMAGE_SIZE)
    assert bool(jnp.all(jnp.isfinite(out)))
    print("KERNEL_OK")
</pallas_src>

<mosaic_0001>
module attributes {stable_mosaic.version = 11 : i64} {
  func.func @_conv_kernel(%arg0: memref<8x128xf32, #tpu.memory_space<vmem>>, %arg1: memref<8x72xbf16, #tpu.memory_space<vmem>>, %arg2: memref<8x128xf32, #tpu.memory_space<vmem>>, %arg3: memref<8x1xf32, #tpu.memory_space<vmem>>, %arg4: memref<8x128xf32, #tpu.memory_space<vmem>>) attributes {dimension_semantics = [], scalar_prefetch = 0 : i64, scratch_operands = 0 : i64, tpu.core_type = #tpu.core_type<tc>} {
    %c0 = arith.constant 0 : index
    %c0_0 = arith.constant 0 : index
    %0 = vector.load %arg0[%c0, %c0_0] : memref<8x128xf32, #tpu.memory_space<vmem>>, vector<8x128xf32>
    %c0_1 = arith.constant 0 : index
    %c0_2 = arith.constant 0 : index
    %1 = vector.load %arg2[%c0_1, %c0_2] : memref<8x128xf32, #tpu.memory_space<vmem>>, vector<8x128xf32>
    %2 = arith.truncf %1 : vector<8x128xf32> to vector<8x128xbf16>
    %c0_3 = arith.constant 0 : index
    %c0_4 = arith.constant 0 : index
    %3 = vector.load %arg1[%c0_3, %c0_4] : memref<8x72xbf16, #tpu.memory_space<vmem>>, vector<8x72xbf16>
    %4 = arith.truncf %0 : vector<8x128xf32> to vector<8x128xbf16>
    %5 = vector.extract_strided_slice %4 {offsets = [0, 119], sizes = [8, 9], strides = [1, 1]} : vector<8x128xbf16> to vector<8x9xbf16>
    %6 = vector.extract_strided_slice %4 {offsets = [0, 0], sizes = [8, 119], strides = [1, 1]} : vector<8x128xbf16> to vector<8x119xbf16>
    %7 = tpu.concatenate %5, %6 in 1 : vector<8x9xbf16>, vector<8x119xbf16> -> vector<8x128xbf16>
    %8 = vector.extract_strided_slice %2 {offsets = [0, 0], sizes = [1, 128], strides = [1, 1]} : vector<8x128xbf16> to vector<1x128xbf16>
    %9 = vector.broadcast %8 : vector<1x128xbf16> to vector<8x128xbf16>
    %10 = arith.mulf %7, %9 : vector<8x128xbf16>
    %11 = vector.extract_strided_slice %4 {offsets = [0, 120], sizes = [8, 8], strides = [1, 1]} : vector<8x128xbf16> to vector<8x8xbf16>
    %12 = vector.extract_strided_slice %4 {offsets = [0, 0], sizes = [8, 120], strides = [1, 1]} : vector<8x128xbf16> to vector<8x120xbf16>
    %13 = tpu.concatenate %11, %12 in 1 : vector<8x8xbf16>, vector<8x120xbf16> -> vector<8x128xbf16>
    %14 = vector.extract_strided_slice %2 {offsets = [1, 0], sizes = [1, 128], strides = [1, 1]} : vector<8x128xbf16> to vector<1x128xbf16>
    %15 = vector.broadcast %14 : vector<1x128xbf16> to vector<8x128xbf16>
    %16 = arith.mulf %13, %15 : vector<8x128xbf16>
    %17 = vector.extract_strided_slice %4 {offsets = [0, 121], sizes = [8, 7], strides = [1, 1]} : vector<8x128xbf16> to vector<8x7xbf16>
    %18 = vector.extract_strided_slice %4 {offsets = [0, 0], sizes = [8, 121], strides = [1, 1]} : vector<8x128xbf16> to vector<8x121xbf16>
    %19 = tpu.concatenate %17, %18 in 1 : vector<8x7xbf16>, vector<8x121xbf16> -> vector<8x128xbf16>
    %20 = vector.extract_strided_slice %2 {offsets = [2, 0], sizes = [1, 128], strides = [1, 1]} : vector<8x128xbf16> to vector<1x128xbf16>
    %21 = vector.broadcast %20 : vector<1x128xbf16> to vector<8x128xbf16>
    %22 = arith.mulf %19, %21 : vector<8x128xbf16>
    %23 = vector.extract_strided_slice %4 {offsets = [0, 127], sizes = [8, 1], strides = [1, 1]} : vector<8x128xbf16> to vector<8x1xbf16>
    %24 = vector.extract_strided_slice %4 {offsets = [0, 0], sizes = [8, 127], strides = [1, 1]} : vector<8x128xbf16> to vector<8x127xbf16>
    %25 = tpu.concatenate %23, %24 in 1 : vector<8x1xbf16>, vector<8x127xbf16> -> vector<8x128xbf16>
    %26 = vector.extract_strided_slice %2 {offsets = [3, 0], sizes = [1, 128], strides = [1, 1]} : vector<8x128xbf16> to vector<1x128xbf16>
    %27 = vector.broadcast %26 : vector<1x128xbf16> to vector<8x128xbf16>
    %28 = arith.mulf %25, %27 : vector<8x128xbf16>
    %29 = vector.extract_strided_slice %4 {offsets = [0, 1], sizes = [8, 127], strides = [1, 1]} : vector<8x128xbf16> to vector<8x127xbf16>
    %30 = vector.extract_strided_slice %4 {offsets = [0, 0], sizes = [8, 1], strides = [1, 1]} : vector<8x128xbf16> to vector<8x1xbf16>
    %31 = tpu.concatenate %29, %30 in 1 : vector<8x127xbf16>, vector<8x1xbf16> -> vector<8x128xbf16>
    %32 = vector.extract_strided_slice %2 {offsets = [4, 0], sizes = [1, 128], strides = [1, 1]} : vector<8x128xbf16> to vector<1x128xbf16>
    %33 = vector.broadcast %32 : vector<1x128xbf16> to vector<8x128xbf16>
    %34 = arith.mulf %31, %33 : vector<8x128xbf16>
    %35 = vector.extract_strided_slice %4 {offsets = [0, 7], sizes = [8, 121], strides = [1, 1]} : vector<8x128xbf16> to vector<8x121xbf16>
    %36 = vector.extract_strided_slice %4 {offsets = [0, 0], sizes = [8, 7], strides = [1, 1]} : vector<8x128xbf16> to vector<8x7xbf16>
    %37 = tpu.concatenate %35, %36 in 1 : vector<8x121xbf16>, vector<8x7xbf16> -> vector<8x128xbf16>
    %38 = vector.extract_strided_slice %2 {offsets = [5, 0], sizes = [1, 128], strides = [1, 1]} : vector<8x128xbf16> to vector<1x128xbf16>
    %39 = vector.broadcast %38 : vector<1x128xbf16> to vector<8x128xbf16>
    %40 = arith.mulf %37, %39 : vector<8x128xbf16>
    %41 = vector.extract_strided_slice %4 {offsets = [0, 8], sizes = [8, 120], strides = [1, 1]} : vector<8x128xbf16> to vector<8x120xbf16>
    %42 = vector.extract_strided_slice %4 {offsets = [0, 0], sizes = [8, 8], strides = [1, 1]} : vector<8x128xbf16> to vector<8x8xbf16>
    %43 = tpu.concatenate %41, %42 in 1 : vector<8x120xbf16>, vector<8x8xbf16> -> vector<8x128xbf16>
    %44 = vector.extract_strided_slice %2 {offsets = [6, 0], sizes = [1, 128], strides = [1, 1]} : vector<8x128xbf16> to vector<1x128xbf16>
    %45 = vector.broadcast %44 : vector<1x128xbf16> to vector<8x128xbf16>
    %46 = arith.mulf %43, %45 : vector<8x128xbf16>
    %47 = vector.extract_strided_slice %4 {offsets = [0, 9], sizes = [8, 119], strides = [1, 1]} : vector<8x128xbf16> to vector<8x119xbf16>
    %48 = vector.extract_strided_slice %4 {offsets = [0, 0], sizes = [8, 9], strides = [1, 1]} : vector<8x128xbf16> to vector<8x9xbf16>
    %49 = tpu.concatenate %47, %48 in 1 : vector<8x119xbf16>, vector<8x9xbf16> -> vector<8x128xbf16>
    %50 = vector.extract_strided_slice %2 {offsets = [7, 0], sizes = [1, 128], strides = [1, 1]} : vector<8x128xbf16> to vector<1x128xbf16>
    %51 = vector.broadcast %50 : vector<1x128xbf16> to vector<8x128xbf16>
    %52 = arith.mulf %49, %51 : vector<8x128xbf16>
    %53 = tpu.concatenate %10, %16, %22, %28, %4, %34, %40, %46, %52 in 0 : vector<8x128xbf16>, vector<8x128xbf16>, vector<8x128xbf16>, vector<8x128xbf16>, vector<8x128xbf16>, vector<8x128xbf16>, vector<8x128xbf16>, vector<8x128xbf16>, vector<8x128xbf16> -> vector<72x128xbf16>
    %cst = arith.constant dense<0.000000e+00> : vector<8x128xf32>
    %54 = tpu.matmul %3, %53, %cst {dimension_numbers = #tpu.dot_dimension_numbers<[1], [0], [0], [1], [0, 0, 1, 1], [], []>} : vector<8x72xbf16>, vector<72x128xbf16>, vector<8x128xf32> -> vector<8x128xf32>
    %c0_5 = arith.constant 0 : index
    %c0_6 = arith.constant 0 : index
    %55 = vector.load %arg3[%c0_5, %c0_6] : memref<8x1xf32, #tpu.memory_space<vmem>>, vector<8x1xf32>
    %56 = vector.broadcast %55 : vector<8x1xf32> to vector<8x128xf32>
    %57 = arith.addf %54, %56 : vector<8x128xf32>
    %c0_7 = arith.constant 0 : index
    %c0_8 = arith.constant 0 : index
    %58 = vector.load %arg4[%c0_7, %c0_8] : memref<8x128xf32, #tpu.memory_space<vmem>>, vector<8x128xf32>
    tpu.vector_store %arg4[%c0_7, %c0_8], %57 {strides = array<i32>} : memref<8x128xf32, #tpu.memory_space<vmem>>, vector<8x128xf32>,
    return
  }
}

</mosaic_0001>

<bundles_post_ra>
// kernel: tpu_custom_call.1
= control target key start
LH: loop header
LB: loop body
LE: loop exit
PB: predicated region body
PF: predicated region fallthrough
CT: control target
= control target key end

     0   :  { %9 = vsyncpa [#allocation3], 0  ;;  %s385_s0 = inlined_call_operand.vmem [shape: f32[8,128], index: 0, kind: input, shape index: {}]   ;;  %s386_s1 = inlined_call_operand.hbm [shape: bf16[8,72], index: 1, kind: input, shape index: {}]   ;;  %s387_s2 = inlined_call_operand.vmem [shape: f32[8,128], index: 2, kind: input, shape index: {}]   ;;  %s388_s3 = inlined_call_operand.vmem [shape: f32[8,1], index: 3, kind: input, shape index: {}]   ;;  %s389_s4 = inlined_call_operand.hbm [shape: f32[8,128], index: 4, kind: output, shape index: {}]  }
   0x1   :  { %10 = vsyncpa [#allocation4], 0  ;;  %s292_s15 = smov [#allocation2]   ;;  %s244_s19 = scalar_lea.hbm %s386_s1, 64 }
   0x2   :  { %s19_s16 = sshll.u32 %s292_s15, 4  ;;  %p245_p0 = scmp.ne.s32.totalorder %s386_s1, %s244_s19  ;;  %s20_s16 = int_to_ptr.vmem [resolvable:$true] %s19_s16 }
   0x3   :  { %p248_p1 = scmp.lt.u32.totalorder %s244_s19, %s386_s1 }
   0x5   :  { %p250_p2 = pnand %p248_p1, %p245_p0 }
   0x7   :  { %253 = shalt.err (!%p250_p2)
}
   0x8   :  { %s254_s24 = scalar_lea.vmem %s20_s16, 64  ;;  %p259_p4 = scmp.lt.s32.totalorder %s20_s16, %s20_s16 }
   0x9   :  { %p255_p3 = scmp.ne.s32.totalorder %s20_s16, %s254_s24  ;;  %p260_p5 = scmp.lt.s32.totalorder %s254_s24, %s254_s24 }
   0xb   :  { %p261_p6 = por %p260_p5, %p259_p4 }
   0xd   :  { %p262_p7 = pnand %p261_p6, %p255_p3 }
   0xf   :  { %265 = shalt.err (!%p262_p7)
}
  0x10   :  { %22 = dma.hbm_to_vmem [thread:$0]  %s386_s1, 64, %s20_s16, [#allocation3]  }
  0x11   :  { %288 = dma.done.wait [#allocation3], 64  }
  0x12   :  { %289 = vsyncadd [#allocation3], 4294967232  ;;  %v293_v0 = vmov 0.0   ;;  %v31_v1 = vld [vmem:[%s385_s0] sm:$0xff]  ;;  %s294_s29 = smov 8   ;;  %s295_s30 = smov 1   ;;  %v44_v7 = vlaneseq }
  0x13   :  { %216 = vmatprep.subr.bf16.mxu0 %v293_v0  ;;  %v346_v2 = vpack.c.bf16 %v31_v1, %v31_v1  ;;  %s296_s5 = smov 9   ;;  %s297_s1 = smov 7   ;;  %vm300_vm0 = vmmov 0   ;;  %v140_v3 = vld [vmem:[%s388_s3] sm:$0xff]  ;;  %v303_v4 = vmov 0   ;;  %vm123_vm1 = vcmask 1043456  }
  0x14   :  { %s298_s6 = smov 127   ;;  %s299_s7 = smov 120   ;;  %226 = vmatprep.mubr.msk.bf16.mxu0 %vm300_vm0, %v293_v0  ;;  %243 = vset.pattern.permute.xlu0 %v303_v4  ;;  %v32_v5 = vld [vmem:[%s387_s2] sm:$0xff]  ;;  %v45_v8 = vshrl.u32 %v44_v7, 7  ;;  %vm146_vm2 = vcmask 588800  }
  0x15   :  { %49 = vrot.lane.b32.xlu0 %v346_v2, %s294_s29  ;;  %70 = vrot.lane.b32.xlu1 %v346_v2, %s295_s30  ;;  %s301_s0 = smov 121   ;;  %s302_s8 = smov 119   ;;  %v33_v6 = vpack.c.bf16 %v32_v5, %v32_v5  ;;  %v34_v49 = vld [vmem:[#allocation2] sm:$0xf] }
  0x16   :  { %v46_v10 = vsub.s32 0, %v45_v8  ;;  %v67_v12 = vsub.s32 1, %v45_v8  ;;  %v85_v20 = vsub.s32 2, %v45_v8  ;;  %v103_v21 = vsub.s32 3, %v45_v8  ;;  %s304_s2 = smov [#allocation5]  }
  0x17   :  { %v53_v9 = vshrl.u32 %v33_v6, 16  ;;  %v42_v14 = vpack.i.b16 %v33_v6, %v33_v6  ;;  %s200_s3 = sshll.u32 %s304_s2, 4  ;;  %s201_s3 = int_to_ptr.vmem [resolvable:$true] %s200_s3 }
  0x18   :  { %s266_s13 = scalar_lea.vmem %s201_s3, 128  ;;  %p271_p9 = scmp.lt.s32.totalorder %s201_s3, %s201_s3 }
  0x19   :  { %37 = vrot.lane.b32.xlu0 %v346_v2, %s296_s5  ;;  %61 = vrot.lane.b32.xlu1 %v346_v2, %s297_s1  ;;  %v54_v11 = vpack.i.b16 %v53_v9, %v53_v9  ;;  %v47_v19 = vrot.slane %v42_v14, %v46_v10  ;;  %v68_v23 = vrot.slane %v42_v14, %v67_v12  ;;  %p267_p8 = scmp.ne.s32.totalorder %s201_s3, %s266_s13  ;;  %p272_p10 = scmp.lt.s32.totalorder %s266_s13, %s266_s13 }
  0x1a   :  { %v86_v28 = vrot.slane %v42_v14, %v85_v20  ;;  %v104_v29 = vrot.slane %v42_v14, %v103_v21 }
  0x1b   :  { %v59_v13 = vrot.slane %v54_v11, %v46_v10  ;;  %v77_v15 = vrot.slane %v54_v11, %v67_v12  ;;  %v95_v37 = vrot.slane %v54_v11, %v85_v20  ;;  %v113_v44 = vrot.slane %v54_v11, %v103_v21  ;;  %p273_p11 = por %p272_p10, %p271_p9 }
  0x1d   :  { %79 = vrot.lane.b32.xlu0 %v346_v2, %s298_s6  ;;  %97 = vrot.lane.b32.xlu1 %v346_v2, %s299_s7  ;;  %p274_p12 = pnand %p273_p11, %p267_p8 }
  0x21   :  { %88 = vrot.lane.b32.xlu0 %v346_v2, %s301_s0  ;;  %106 = vrot.lane.b32.xlu1 %v346_v2, %s302_s8 }
  0x25   :  { %143 = vperm.xlu0 %243, %v140_v3  }
  0x87   :  { %v50_v16 = vpop.permute.xlu0 %49  ;;  %v71_v17 = vpop.permute.xlu1 %70 }
  0x88   :  { %v60_v18 = vmul.bf16 %v59_v13, %v50_v16  ;;  %v78_v22 = vmul.bf16 %v77_v15, %v71_v17 }
  0x8a   :  { %v116_v26 = vrot.slane %v60_v18, 4  ;;  %v118_v30 = vrot.slane %v78_v22, 4 }
  0x8b   :  { %v38_v24 = vpop.permute.xlu0 %37  ;;  %v62_v25 = vpop.permute.xlu1 %61 }
  0x8c   :  { %v48_v27 = vmul.bf16 %v47_v19, %v38_v24  ;;  %v69_v31 = vmul.bf16 %v68_v23, %v62_v25 }
  0x8e   :  { %v126_v32 = vsel %vm123_vm1, %v48_v27, %v116_v26  ;;  %v130_v39 = vsel %vm123_vm1, %v69_v31, %v118_v30 }
  0x8f   :  { %217 = vmatpush3.bf16.msra.mxu0 %v126_v32  ;;  %v80_v33 = vpop.permute.xlu0 %79  ;;  %v98_v34 = vpop.permute.xlu1 %97 }
  0x90   :  { %v87_v35 = vmul.bf16 %v86_v28, %v80_v33  ;;  %218 = vmatprep.subr.bf16.mxu0 %v293_v0  ;;  %v105_v36 = vmul.bf16 %v104_v29, %v98_v34 }
  0x92   :  { %v120_v38 = vrot.slane %v87_v35, 4  ;;  %v122_v41 = vrot.slane %v105_v36, 4 }
  0x93   :  { %219 = vmatpush3.bf16.msra.mxu0 %v130_v39  ;;  %v89_v40 = vpop.permute.xlu0 %88  ;;  %v107_v45 = vpop.permute.xlu1 %106 }
  0x94   :  { %220 = vmatprep.subr.bf16.mxu0 %v293_v0  ;;  %v134_v42 = vsel %vm123_vm1, %v346_v2, %v120_v38  ;;  %v96_v43 = vmul.bf16 %v95_v37, %v89_v40  ;;  %v114_v46 = vmul.bf16 %v113_v44, %v107_v45 }
  0x96   :  { %v138_v47 = vsel %vm123_vm1, %v96_v43, %v122_v41  ;;  %v151_v48 = vsel %vm123_vm1, %v114_v46, 0 }
  0x97   :  { %221 = vmatpush3.bf16.msra.mxu0 %v134_v42 }
  0x98   :  { %222 = vmatprep.subr.bf16.mxu0 %v293_v0 }
  0x9b   :  { %223 = vmatpush3.bf16.msra.mxu0 %v138_v47 }
  0x9c   :  { %224 = vmatprep.subr.bf16.mxu0 %v293_v0 }
  0x9f   :  { %225 = vmatpush3.bf16.msra.mxu0 %v151_v48 }
  0xa2   :  { %227 = vmatmul.mubr.msk.bf16.vlgmr.msra.gmra.mrb[0].mxu0 %vm146_vm2, %v34_v49 }
  0xa4   :  { %v144_v50 = vpop.permute.xlu0 %143 }
 0x175   :  { %v187_v51 = vpop.f32.mrb[0].mxu0 }
 0x176   :  { %v188_v52 = vadd.f32 %v187_v51, %v144_v50  ;;  %v228_v53 = vpop.f32.mrb[1].mxu0 }
 0x177   :  { %v190_v54 = vpop.f32.mrb[2].mxu0 }
 0x178   :  { %193 = vst [vmem:[#allocation5] sm:$0xff] %v188_v52  ;;  %v229_v55 = vpop.f32.mrb[3].mxu0 }
 0x179   :  { %277 = shalt.err (!%p274_p12)
}
 0x17a   :  { %s278_s16 = scalar_lea.hbm %s389_s4, 128 }
 0x17b   :  { %p279_p13 = scmp.ne.s32.totalorder %s389_s4, %s278_s16  ;;  %p282_p0 = scmp.lt.u32.totalorder %s278_s16, %s389_s4 }
 0x17d   :  { %p284_p1 = pnand %p282_p0, %p279_p13 }
 0x17f   :  { %287 = shalt.err (!%p284_p1)
}
 0x180   :  { %203 = dma.vmem_to_hbm [thread:$0]  %s201_s3, 128, %s389_s4, [#allocation4]  }
 0x181   :  { %290 = dma.done.wait [#allocation4], 128  }
 0x182   :  { %291 = vsyncadd [#allocation4], 4294967168 }
 0x183   :  { %207 = vsyncpa [#allocation3], 1 }
 0x184   :  { %208 = vsyncpa [#allocation4], 1 }

</bundles_post_ra>
